<compile_context>
chip_gen: v5e
topology: v5e:2x2
jax: 0.10.0
libtpu: 0.0.40
codegen_flags: <defaults>
</compile_context>

<pallas_src>
import functools

import numpy as np

import jax
import jax.numpy as jnp
from jax.experimental import pallas as pl
from jax.experimental.pallas import tpu as pltpu


def _round_up(x, m):
    return (x + m - 1) // m * m


def _make_selector():
    """(96, 128) 0/1 matrix mapping packed-row lanes to per-pose sums.

    Lane l of a packed row holds component (l % 12) of pose (l // 12).
    Column p   (p in 0..7)  accumulates the position components (3, 7, 11).
    Column p+8 (p in 0..7)  accumulates the rotation components (the other 9).
    Columns 16..127 are zero (keeps the matmul output lane-native).
    """
    comp = np.arange(96) % 12
    pose = np.arange(96) // 12
    is_pos = np.isin(comp, (3, 7, 11))
    g = np.zeros((96, 128), np.float32)
    g[np.arange(96), np.where(is_pos, pose, pose + 8)] = 1.0
    return g


def _pose_loss_kernel(w_ref, est_ref, gt_ref, g_ref, out_ref, acc_ref, *,
                      inv_n, rows_total, block_rows, needs_mask):
    """One grid step over a (T, 96) packed-pose tile.

    w_ref   : SMEM f32[3]        -- [w_x, w_q, bias] precombined scalar weights
    est_ref : VMEM (T, 96)       -- 8 estimated poses per row
    gt_ref  : VMEM (T, 96)       -- 8 ground-truth poses per row
    g_ref   : VMEM bf16[96, 128] -- 0/1 selector (resident across the grid)
    out_ref : SMEM f32[1, 1]     -- scalar loss (written on last step)
    acc_ref : VMEM f32[T, 128]   -- running per-lane sums of pose norms
    """
    i = pl.program_id(0)

    @pl.when(i == 0)
    def _init():
        acc_ref[...] = jnp.zeros_like(acc_ref)

    diff = est_ref[...].astype(jnp.float32) - gt_ref[...].astype(jnp.float32)
    d2 = diff * diff                                            # (T, 96) f32

    # Exact-f32 selector matmul on the MXU: split d2 into three bf16 terms
    # (the selector is exactly representable in bf16), accumulate in f32.
    g = g_ref[...]
    p0 = d2.astype(jnp.bfloat16)
    r1 = d2 - p0.astype(jnp.float32)
    p1 = r1.astype(jnp.bfloat16)
    p2 = (r1 - p1.astype(jnp.float32)).astype(jnp.bfloat16)
    ss = (jnp.dot(p0, g, preferred_element_type=jnp.float32)
          + jnp.dot(p1, g, preferred_element_type=jnp.float32)
          + jnp.dot(p2, g, preferred_element_type=jnp.float32))  # (T, 128)

    # Clamp against tiny negative rounding residue, then one lane-dense sqrt:
    # cols 0..7 -> position norms, cols 8..15 -> rotation norms, rest stay 0.
    norms = jnp.sqrt(jnp.maximum(ss, 0.0))

    if needs_mask:  # static: only emitted when the last block is ragged
        rows = i * block_rows + jax.lax.broadcasted_iota(
            jnp.int32, norms.shape, 0)
        norms = jnp.where(rows < rows_total, norms, 0.0)

    acc_ref[...] += norms

    @pl.when(i == pl.num_programs(0) - 1)
    def _finalize():
        col_sums = jnp.sum(acc_ref[...], axis=0, keepdims=True)  # (1, 128)
        l_x = jnp.sum(col_sums[:, 0:8]) * inv_n
        l_q = jnp.sum(col_sums[:, 8:16]) * inv_n
        out_ref[0, 0] = w_ref[0] * l_x + w_ref[1] * l_q + w_ref[2]


def camera_pose_loss(est_pose, gt_pose, s_x, s_q, *, learnable=True, norm=2,
                     tile_rows=2048):
    """est_pose, gt_pose: (N, 12) float32 (bf16 also accepted). Returns scalar."""
    if norm != 2:
        raise NotImplementedError("only loss_norm == 2 is implemented")
    n, d = est_pose.shape
    assert d == 12 and gt_pose.shape == (n, 12)
    assert tile_rows % 8 == 0

    # Pack 8 poses per row: a contiguous reshape (free) when N % 8 == 0.
    # Zero-padded poses contribute sqrt(0) = 0; we divide by the true N.
    n_pack = max(64, _round_up(n, 8))
    if n_pack != n:
        # TODO(synk): this path copies; batch sizes that are multiples of 8
        # (and >= 64) go straight through with no wrapper data movement.
        est_pose = jnp.pad(est_pose, ((0, n_pack - n), (0, 0)))
        gt_pose = jnp.pad(gt_pose, ((0, n_pack - n), (0, 0)))
    r = n_pack // 8
    est96 = est_pose.reshape(r, 96)
    gt96 = gt_pose.reshape(r, 96)

    t = r if r <= tile_rows else tile_rows
    grid = pl.cdiv(r, t)
    needs_mask = (r % t) != 0

    # Pre-combine the scalar weights so the kernel needs no transcendentals
    # on scalars:  learnable: l_x*e^{-s_x} + l_q*e^{-s_q} + (s_x + s_q)
    #              fixed    : s_x*l_x + s_q*l_q
    s_x = jnp.asarray(s_x, jnp.float32)
    s_q = jnp.asarray(s_q, jnp.float32)
    if learnable:
        w = jnp.stack([jnp.exp(-s_x), jnp.exp(-s_q), s_x + s_q])
    else:
        w = jnp.stack([s_x, s_q, jnp.zeros_like(s_x)])

    g = jnp.asarray(_make_selector(), dtype=jnp.bfloat16)

    kernel = functools.partial(
        _pose_loss_kernel,
        inv_n=1.0 / n,
        rows_total=r,
        block_rows=t,
        needs_mask=needs_mask,
    )

    # Working set: est + gt double-buffered blocks (lane-padded to 128),
    # the accumulator, the selector, plus headroom for compiler scratch.
    block_bytes = t * 128 * 4
    vmem_limit = min(2 * 2 * block_bytes + block_bytes + 2 * 96 * 128 * 4
                     + (4 << 20), 100 * 1024 * 1024)

    itemsize = jnp.dtype(est96.dtype).itemsize
    out = pl.pallas_call(
        kernel,
        out_shape=jax.ShapeDtypeStruct((1, 1), jnp.float32),
        grid=(grid,),
        in_specs=[
            pl.BlockSpec(memory_space=pltpu.MemorySpace.SMEM),   # w (3,)
            pl.BlockSpec((t, 96), lambda i: (i, 0)),             # est packed
            pl.BlockSpec((t, 96), lambda i: (i, 0)),             # gt packed
            pl.BlockSpec((96, 128), lambda i: (0, 0)),           # selector
        ],
        out_specs=pl.BlockSpec(memory_space=pltpu.MemorySpace.SMEM),
        scratch_shapes=[pltpu.VMEM((t, 128), jnp.float32)],
        compiler_params=pltpu.CompilerParams(
            dimension_semantics=("arbitrary",),
            vmem_limit_bytes=vmem_limit,
        ),
        cost_estimate=pl.CostEstimate(
            flops=int(48 * n_pack + 3 * 2 * 96 * 128 * r),
            transcendentals=2 * n_pack,
            bytes_accessed=2 * 12 * n_pack * itemsize + 96 * 128 * 2 + 16,
        ),
    )(w, est96, gt96, g)
    return out[0, 0]


def _reference_loss(est_pose, gt_pose, s_x, s_q, learnable=True, norm=2):
    bs = est_pose.shape[0]
    est = est_pose.reshape(bs, 3, 4)
    gt = gt_pose.reshape(bs, 3, 4)
    pos_est, pos_gt = est[:, :, 3], gt[:, :, 3]
    rot_est = est[:, :, :3].reshape(bs, 9)
    rot_gt = gt[:, :, :3].reshape(bs, 9)
    l_x = jnp.mean(jnp.linalg.norm(pos_gt - pos_est, ord=norm, axis=1))
    l_q = jnp.mean(jnp.linalg.norm(rot_gt - rot_est, ord=norm, axis=1))
    if learnable:
        return l_x * jnp.exp(-s_x) + s_x + l_q * jnp.exp(-s_q) + s_q
    return s_x * l_x + s_q * l_q


if __name__ == "__main__":
    # Deterministic "parameters" (config.s_x / config.s_q) -- synthetic init.
    s_x = jnp.float32(0.0)
    s_q = jnp.float32(-3.0)

    key = jax.random.PRNGKey(0)
    k1, k2, k3, k4, k5, k6 = jax.random.split(key, 6)

    # Small case: N multiple of 8 -> free-reshape path, single grid step.
    N = 64
    est_pose = jax.random.normal(k1, (N, 12), dtype=jnp.float32)
    gt_pose = jax.random.normal(k2, (N, 12), dtype=jnp.float32)

    loss = camera_pose_loss(est_pose, gt_pose, s_x, s_q, learnable=True)
    loss = jax.block_until_ready(loss)
    ref = _reference_loss(est_pose, gt_pose, s_x, s_q, learnable=True)
    assert jnp.allclose(loss, ref, rtol=1e-5, atol=1e-5), (loss, ref)

    # Non-learnable (fixed weights) path.
    loss_nl = camera_pose_loss(est_pose, gt_pose, 1.0, 2.0, learnable=False)
    loss_nl = jax.block_until_ready(loss_nl)
    ref_nl = _reference_loss(est_pose, gt_pose, 1.0, 2.0, learnable=False)
    assert jnp.allclose(loss_nl, ref_nl, rtol=1e-5, atol=1e-5), (loss_nl, ref_nl)

    # Multi-tile case with a ragged tail block: exercises the grid,
    # accumulator carry and in-kernel tail masking.
    N2 = 600  # -> 75 packed rows, tile_rows=32 -> grid of 3, last block ragged
    est2 = jax.random.normal(k3, (N2, 12), dtype=jnp.float32)
    gt2 = jax.random.normal(k4, (N2, 12), dtype=jnp.float32)
    loss2 = camera_pose_loss(est2, gt2, s_x, s_q, learnable=True, tile_rows=32)
    loss2 = jax.block_until_ready(loss2)
    ref2 = _reference_loss(est2, gt2, s_x, s_q, learnable=True)
    assert jnp.allclose(loss2, ref2, rtol=1e-5, atol=1e-5), (loss2, ref2)

    # Batch not a multiple of 8: exercises the (small) zero-pad path.
    N3 = 13
    est3 = jax.random.normal(k5, (N3, 12), dtype=jnp.float32)
    gt3 = jax.random.normal(k6, (N3, 12), dtype=jnp.float32)
    loss3 = camera_pose_loss(est3, gt3, s_x, s_q, learnable=True)
    loss3 = jax.block_until_ready(loss3)
    ref3 = _reference_loss(est3, gt3, s_x, s_q, learnable=True)
    assert jnp.allclose(loss3, ref3, rtol=1e-5, atol=1e-5), (loss3, ref3)

    print("KERNEL_OK")
</pallas_src>

<mosaic_0001>
module attributes {stable_mosaic.version = 11 : i64} {
  func.func @_pose_loss_kernel(%arg0: i32, %arg1: memref<3xf32, #tpu.memory_space<smem>>, %arg2: memref<8x96xf32, #tpu.memory_space<vmem>>, %arg3: memref<8x96xf32, #tpu.memory_space<vmem>>, %arg4: memref<96x128xbf16, #tpu.memory_space<vmem>>, %arg5: memref<1x1xf32, #tpu.memory_space<smem>>, %arg6: memref<8x128xf32, #tpu.memory_space<vmem>>) attributes {dimension_semantics = [#tpu.dimension_semantics<arbitrary>], iteration_bounds = array<i64: 1>, scalar_prefetch = 0 : i64, scratch_operands = 1 : i64, tpu.core_type = #tpu.core_type<tc>, window_params = [{transform_indices = @transform_0, window_bounds = array<i64: 3>}, {transform_indices = @transform_1, window_bounds = array<i64: 8, 96>}, {transform_indices = @transform_2, window_bounds = array<i64: 8, 96>}, {pipeline_mode = #tpu.pipeline_mode<synchronous>, transform_indices = @transform_3, window_bounds = array<i64: 96, 128>}, {transform_indices = @transform_4, window_bounds = array<i64: 1, 1>}]} {
    %c0_i32 = arith.constant 0 : i32
    %0 = arith.cmpi eq, %arg0, %c0_i32 : i32
    %1 = arith.extui %0 : i1 to i32
    %c0_i32_0 = arith.constant 0 : i32
    %2 = arith.cmpi ne, %1, %c0_i32_0 : i32
    scf.if %2 {
      %cst_15 = arith.constant 0.000000e+00 : f32
      %29 = vector.broadcast %cst_15 : f32 to vector<8x128xf32>
      %c0_16 = arith.constant 0 : index
      %c0_17 = arith.constant 0 : index
      %30 = vector.load %arg6[%c0_16, %c0_17] : memref<8x128xf32, #tpu.memory_space<vmem>>, vector<8x128xf32>
      tpu.vector_store %arg6[%c0_16, %c0_17], %29 {strides = array<i32>} : memref<8x128xf32, #tpu.memory_space<vmem>>, vector<8x128xf32>,
    } else {
    }
    %c0 = arith.constant 0 : index
    %c0_1 = arith.constant 0 : index
    %3 = vector.load %arg2[%c0, %c0_1] : memref<8x96xf32, #tpu.memory_space<vmem>>, vector<8x96xf32>
    %c0_2 = arith.constant 0 : index
    %c0_3 = arith.constant 0 : index
    %4 = vector.load %arg3[%c0_2, %c0_3] : memref<8x96xf32, #tpu.memory_space<vmem>>, vector<8x96xf32>
    %5 = arith.subf %3, %4 : vector<8x96xf32>
    %6 = arith.mulf %5, %5 : vector<8x96xf32>
    %c0_4 = arith.constant 0 : index
    %c0_5 = arith.constant 0 : index
    %7 = vector.load %arg4[%c0_4, %c0_5] : memref<96x128xbf16, #tpu.memory_space<vmem>>, vector<96x128xbf16>
    %8 = arith.truncf %6 : vector<8x96xf32> to vector<8x96xbf16>
    %9 = arith.extf %8 : vector<8x96xbf16> to vector<8x96xf32>
    %10 = arith.subf %6, %9 : vector<8x96xf32>
    %11 = arith.truncf %10 : vector<8x96xf32> to vector<8x96xbf16>
    %12 = arith.extf %11 : vector<8x96xbf16> to vector<8x96xf32>
    %13 = arith.subf %10, %12 : vector<8x96xf32>
    %14 = arith.truncf %13 : vector<8x96xf32> to vector<8x96xbf16>
    %cst = arith.constant dense<0.000000e+00> : vector<8x128xf32>
    %15 = tpu.matmul %8, %7, %cst {dimension_numbers = #tpu.dot_dimension_numbers<[1], [0], [0], [1], [0, 0, 1, 1], [], []>} : vector<8x96xbf16>, vector<96x128xbf16>, vector<8x128xf32> -> vector<8x128xf32>
    %cst_6 = arith.constant dense<0.000000e+00> : vector<8x128xf32>
    %16 = tpu.matmul %11, %7, %cst_6 {dimension_numbers = #tpu.dot_dimension_numbers<[1], [0], [0], [1], [0, 0, 1, 1], [], []>} : vector<8x96xbf16>, vector<96x128xbf16>, vector<8x128xf32> -> vector<8x128xf32>
    %17 = arith.addf %15, %16 : vector<8x128xf32>
    %cst_7 = arith.constant dense<0.000000e+00> : vector<8x128xf32>
    %18 = tpu.matmul %14, %7, %cst_7 {dimension_numbers = #tpu.dot_dimension_numbers<[1], [0], [0], [1], [0, 0, 1, 1], [], []>} : vector<8x96xbf16>, vector<96x128xbf16>, vector<8x128xf32> -> vector<8x128xf32>
    %19 = arith.addf %17, %18 : vector<8x128xf32>
    %cst_8 = arith.constant 0.000000e+00 : f32
    %20 = vector.broadcast %cst_8 : f32 to vector<8x128xf32>
    %21 = arith.maximumf %19, %20 : vector<8x128xf32>
    %22 = math.sqrt %21 : vector<8x128xf32>
    %c0_9 = arith.constant 0 : index
    %c0_10 = arith.constant 0 : index
    %23 = vector.load %arg6[%c0_9, %c0_10] : memref<8x128xf32, #tpu.memory_space<vmem>>, vector<8x128xf32>
    %24 = arith.addf %23, %22 : vector<8x128xf32>
    %c0_11 = arith.constant 0 : index
    %c0_12 = arith.constant 0 : index
    %25 = vector.load %arg6[%c0_11, %c0_12] : memref<8x128xf32, #tpu.memory_space<vmem>>, vector<8x128xf32>
    tpu.vector_store %arg6[%c0_11, %c0_12], %24 {strides = array<i32>} : memref<8x128xf32, #tpu.memory_space<vmem>>, vector<8x128xf32>,
    %c0_i32_13 = arith.constant 0 : i32
    %26 = arith.cmpi eq, %arg0, %c0_i32_13 : i32
    %27 = arith.extui %26 : i1 to i32
    %c0_i32_14 = arith.constant 0 : i32
    %28 = arith.cmpi ne, %27, %c0_i32_14 : i32
    scf.if %28 {
      %c0_15 = arith.constant 0 : index
      %c0_16 = arith.constant 0 : index
      %29 = vector.load %arg6[%c0_15, %c0_16] : memref<8x128xf32, #tpu.memory_space<vmem>>, vector<8x128xf32>
      %cst_17 = arith.constant dense<0.000000e+00> : vector<128xf32>
      %30 = vector.multi_reduction <add>, %29, %cst_17 [0] : vector<8x128xf32> to vector<128xf32>
      %31 = vector.shape_cast %30 : vector<128xf32> to vector<1x128xf32>
      %32 = vector.extract_strided_slice %31 {offsets = [0, 0], sizes = [1, 8], strides = [1, 1]} : vector<1x128xf32> to vector<1x8xf32>
      %33 = vector.shape_cast %32 : vector<1x8xf32> to vector<1x1x8xf32>
      %cst_18 = arith.constant dense<0.000000e+00> : vector<1xf32>
      %34 = vector.multi_reduction <add>, %33, %cst_18 [1, 2] : vector<1x1x8xf32> to vector<1xf32>
      %35 = vector.shape_cast %34 : vector<1xf32> to vector<1x1x1xf32>
      %36 = vector.extract %35[0, 0, 0] : f32 from vector<1x1x1xf32>
      %cst_19 = arith.constant 1.562500e-02 : f32
      %37 = arith.mulf %36, %cst_19 : f32
      %38 = vector.extract_strided_slice %31 {offsets = [0, 8], sizes = [1, 8], strides = [1, 1]} : vector<1x128xf32> to vector<1x8xf32>
      %39 = vector.shape_cast %38 : vector<1x8xf32> to vector<1x1x8xf32>
      %cst_20 = arith.constant dense<0.000000e+00> : vector<1xf32>
      %40 = vector.multi_reduction <add>, %39, %cst_20 [1, 2] : vector<1x1x8xf32> to vector<1xf32>
      %41 = vector.shape_cast %40 : vector<1xf32> to vector<1x1x1xf32>
      %42 = vector.extract %41[0, 0, 0] : f32 from vector<1x1x1xf32>
      %cst_21 = arith.constant 1.562500e-02 : f32
      %43 = arith.mulf %42, %cst_21 : f32
      %c0_22 = arith.constant 0 : index
      %44 = memref.load %arg1[%c0_22] : memref<3xf32, #tpu.memory_space<smem>>
      %45 = arith.mulf %44, %37 : f32
      %c1 = arith.constant 1 : index
      %46 = memref.load %arg1[%c1] : memref<3xf32, #tpu.memory_space<smem>>
      %47 = arith.mulf %46, %43 : f32
      %48 = arith.addf %45, %47 : f32
      %c2 = arith.constant 2 : index
      %49 = memref.load %arg1[%c2] : memref<3xf32, #tpu.memory_space<smem>>
      %50 = arith.addf %48, %49 : f32
      %c0_23 = arith.constant 0 : index
      %c0_24 = arith.constant 0 : index
      %51 = memref.load %arg5[%c0_23, %c0_24] : memref<1x1xf32, #tpu.memory_space<smem>>
      memref.store %50, %arg5[%c0_23, %c0_24] : memref<1x1xf32, #tpu.memory_space<smem>>
    } else {
    }
    return
  }
  func.func @transform_0(%arg0: i32) -> i32 {
    %c0_i32 = arith.constant 0 : i32
    %c0_i32_0 = arith.constant 0 : i32
    return %c0_i32 : i32
  }
  func.func @transform_1(%arg0: i32) -> (i32, i32) {
    %c0_i32 = arith.constant 0 : i32
    %c0_i32_0 = arith.constant 0 : i32
    return %arg0, %c0_i32 : i32, i32
  }
  func.func @transform_2(%arg0: i32) -> (i32, i32) {
    %c0_i32 = arith.constant 0 : i32
    %c0_i32_0 = arith.constant 0 : i32
    return %arg0, %c0_i32 : i32, i32
  }
  func.func @transform_3(%arg0: i32) -> (i32, i32) {
    %c0_i32 = arith.constant 0 : i32
    %c0_i32_0 = arith.constant 0 : i32
    %c0_i32_1 = arith.constant 0 : i32
    return %c0_i32, %c0_i32_0 : i32, i32
  }
  func.func @transform_4(%arg0: i32) -> (i32, i32) {
    %c0_i32 = arith.constant 0 : i32
    %c0_i32_0 = arith.constant 0 : i32
    %c0_i32_1 = arith.constant 0 : i32
    return %c0_i32, %c0_i32_0 : i32, i32
  }
}

</mosaic_0001>

<bundles_post_ra>
// kernel: tpu_custom_call.1
= control target key start
LH: loop header
LB: loop body
LE: loop exit
PB: predicated region body
PF: predicated region fallthrough
CT: control target
= control target key end

     0   :  { %9 = vsyncpa [#allocation5], 0  ;;  %s470_s0 = inlined_call_operand.hbm [shape: f32[3], index: 0, kind: input, shape index: {}]   ;;  %s471_s1 = inlined_call_operand.hbm [shape: f32[8,96], index: 1, kind: input, shape index: {}]   ;;  %s472_s2 = inlined_call_operand.hbm [shape: f32[8,96], index: 2, kind: input, shape index: {}]   ;;  %s473_s3 = inlined_call_operand.hbm [shape: bf16[96,128], index: 3, kind: input, shape index: {}]   ;;  %s474_s4 = inlined_call_operand.hbm [shape: f32[1,1], index: 4, kind: output, shape index: {}]  }
   0x1   :  { %10 = vsyncpa [#allocation4], 0 }
   0x2   :  { %11 = vsyncpa [#allocation9], 0  ;;  %s38_s17 = sshll.u32 %s472_s2, 4  ;;  %s39_s17 = int_to_ptr.hbm [resolvable:$true] %s38_s17 }
   0x3   :  { %12 = vsyncpa [#allocation6], 0  ;;  %s422_s18 = smov [#allocation8]   ;;  %s18_s22 = sshll.u32 %s470_s0, 4  ;;  %s19_s22 = int_to_ptr.hbm [resolvable:$true] %s18_s22 }
   0x4   :  { %s40_s19 = sshll.u32 %s422_s18, 4  ;;  %s423_s23 = smov [#allocation3]   ;;  %s41_s19 = int_to_ptr.vmem [resolvable:$true] %s40_s19 }
   0x5   :  { %43 = dma.hbm_to_vmem [thread:$0]  %s39_s17, 128, %s41_s19, [#allocation9]  }
   0x6   :  { %21 = dma.hbm_to_smem %s19_s22, 16, %s423_s23, [#allocation5]  }
   0x7   :  { %s27_s26 = sshll.u32 %s471_s1, 4  ;;  %s424_s27 = smov [#allocation7]   ;;  %s28_s26 = int_to_ptr.hbm [resolvable:$true] %s27_s26 }
   0x8   :  { %s29_s2 = sshll.u32 %s424_s27, 4  ;;  %s48_s30 = sshll.u32 %s473_s3, 4  ;;  %s30_s2 = int_to_ptr.vmem [resolvable:$true] %s29_s2  ;;  %s49_s30 = int_to_ptr.hbm [resolvable:$true] %s48_s30 }
   0x9   :  { %32 = dma.hbm_to_vmem [thread:$0]  %s28_s26, 128, %s30_s2, [#allocation4]  }
   0xa   :  { %s425_s5 = smov [#allocation10]   ;;  %s426_s6 = smov 64  }
   0xb   :  { %s50_s0 = sshll.u32 %s425_s5, 4  ;;  %s427_s7 = smov 4   ;;  %s51_s0 = int_to_ptr.vmem [resolvable:$true] %s50_s0 }
   0xc   :  { %56 = dma.hbm_to_vmem [thread:$0]  %s49_s30, 768, %s51_s0, [#allocation9], %s426_s6, %s426_s6, %s427_s7  }
   0xd   :  { %414 = dma.done.wait [#allocation5], 16  }
   0xe   :  { %415 = vsyncadd [#allocation5], 4294967280 }
   0xf   :  { %416 = dma.done.wait [#allocation4], 128  }
  0x10   :  { %417 = vsyncadd [#allocation4], 4294967168 }
  0x11   :  { %418 = dma.done.wait [#allocation9], 896  }
  0x12   :  { %419 = vsyncadd [#allocation9], 4294966400 }
  0x13   :  { %73 = sfence }
  0x14   :  { %v303_v0 = vld [vmem:[#allocation10 + $0x28] sm:$0xff]  ;;  %v302_v1 = vld [vmem:[#allocation10 + $0x20] sm:$0xff]  ;;  %v80_v2 = vld [vmem:[#allocation7] sm:$0xff]  ;;  %vm139_vm0 = vcmask 785408   ;;  %s428_s1 = smov 120   ;;  %vm215_vm3 = vcmask 57344  }
  0x15   :  { %145 = vmatpush.bf16.msra.mxu0 %v303_v0  ;;  %161 = vmatpush.bf16.msra.mxu1 %v303_v0  ;;  %v81_v3 = vld [vmem:[#allocation8] sm:$0xff]  ;;  %v300_v9 = vld [vmem:[#allocation10 + $0x10] sm:$0xff]  ;;  %v299_v12 = vld [vmem:[#allocation10 + $0x8] sm:$0xff]  ;;  %s242_s3 = sld [smem:[#allocation3]]  ;;  %s256_s18 = sshll.u32 %s474_s4, 4  ;;  %s257_s18 = int_to_ptr.hbm [resolvable:$true] %s256_s18 }
  0x16   :  { %177 = vmatpush.bf16.msra.mxu2 %v303_v0  ;;  %v82_v4 = vsub.f32 %v80_v2, %v81_v3  ;;  %v301_v6 = vld [vmem:[#allocation10 + $0x18] sm:$0xff]  ;;  %v298_v14 = vld [vmem:[#allocation10] sm:$0xff]  ;;  %s296_s9 = sld [smem:[#allocation3 + $0x1]]  ;;  %s429_s21 = smov [#allocation11]  }
  0x17   :  { %s297_s11 = sld [smem:[#allocation3 + $0x2]] }
  0x18   :  { %v83_v5 = vmul.f32 %v82_v4, %v82_v4 }
  0x19   :  { %146 = vmatpush.bf16.msra.mxu0 %v302_v1  ;;  %162 = vmatpush.bf16.msra.mxu1 %v302_v1 }
  0x1a   :  { %178 = vmatpush.bf16.msra.mxu2 %v302_v1  ;;  %v96_v7 = vpack.c.bf16 %v83_v5, %v83_v5 }
  0x1c   :  { %v97_v8 = vunpack.c.l.bf16 %v96_v7 }
  0x1d   :  { %147 = vmatpush.bf16.msra.mxu0 %v301_v6  ;;  %163 = vmatpush.bf16.msra.mxu1 %v301_v6 }
  0x1e   :  { %179 = vmatpush.bf16.msra.mxu2 %v301_v6  ;;  %v98_v10 = vsub.f32 %v83_v5, %v97_v8 }
  0x20   :  { %v99_v11 = vpack.c.bf16 %v98_v10, %v98_v10 }
  0x21   :  { %148 = vmatpush.bf16.msra.mxu0 %v300_v9  ;;  %164 = vmatpush.bf16.msra.mxu1 %v300_v9 }
  0x22   :  { %180 = vmatpush.bf16.msra.mxu2 %v300_v9  ;;  %v100_v13 = vunpack.c.l.bf16 %v99_v11 }
  0x24   :  { %v101_v15 = vsub.f32 %v98_v10, %v100_v13 }
  0x25   :  { %149 = vmatpush.bf16.msra.mxu0 %v299_v12  ;;  %165 = vmatpush.bf16.msra.mxu1 %v299_v12 }
  0x26   :  { %181 = vmatpush.bf16.msra.mxu2 %v299_v12  ;;  %v102_v16 = vpack.c.bf16 %v101_v15, %v101_v15 }
  0x29   :  { %150 = vmatpush.bf16.msra.mxu0 %v298_v14  ;;  %166 = vmatpush.bf16.msra.mxu1 %v298_v14 }
  0x2a   :  { %182 = vmatpush.bf16.msra.mxu2 %v298_v14 }
  0x2c   :  { %293 = vmatmul.msk.bf16.vlgmr.msra.gmra.mxu0 %vm139_vm0, %v99_v11  ;;  %294 = vmatmul.msk.bf16.vlgmr.msra.gmra.mxu1 %vm139_vm0, %v96_v7 }
  0x2d   :  { %295 = vmatmul.msk.bf16.vlgmr.msra.gmra.mxu2 %vm139_vm0, %v102_v16 }
  0xa9   :  { %v152_v17 = vpop.f32.mrf.mxu0  ;;  %v168_v18 = vpop.f32.mrf.mxu1 }
  0xaa   :  { %v169_v19 = vadd.f32 %v168_v18, %v152_v17 }
  0xb0   :  { %v184_v20 = vpop.f32.mrf.mxu2 }
  0xb1   :  { %v188_v21 = vadd.f32 %v184_v20, %v169_v19  ;;  %v154_v22 = vpop.f32.mrf.mxu0  ;;  %v170_v23 = vpop.f32.mrf.mxu1 }
  0xb3   :  { %v189_v24 = vmax.f32 %v188_v21, 0.0 }
  0xb5   :  { %316 = vrsqrt.f32 %v189_v24  ;;  %vm197_vm1 = vcmp.eq.f32.partialorder %v189_v24, inf  ;;  %v200_v33 = vand.u32 2147483648, %v189_v24  ;;  %vm199_vm2 = vcmp.eq.f32.partialorder %v189_v24, 0.0 }
  0xb8   :  { %v186_v25 = vpop.f32.mrf.mxu2 }
  0xbb   :  { %v317_v26 = vpop.eup %316 }
  0xbc   :  { %v191_v27 = vmul.f32 %v317_v26, %v189_v24 }
  0xbe   :  { %v192_v28 = vmul.f32 %v317_v26, %v191_v27 }
  0xc0   :  { %v193_v29 = vmul.f32 0.5, %v192_v28 }
  0xc2   :  { %v194_v30 = vsub.f32 1.5, %v193_v29 }
  0xc4   :  { %v195_v31 = vmul.f32 %v317_v26, %v194_v30 }
  0xc6   :  { %v196_v32 = vmul.f32 %v195_v31, %v189_v24 }
  0xc8   :  { %v198_v34 = vsel %vm197_vm1, %v189_v24, %v196_v32 }
  0xc9   :  { %v201_v35 = vsel %vm199_vm2, %v200_v33, %v198_v34 }
  0xca   :  { %v209_v36 = vrot.slane %v201_v35, 4 }
  0xcc   :  { %v210_v37 = vadd.f32 %v209_v36, %v201_v35 }
  0xce   :  { %v211_v38 = vrot.slane %v210_v37, 2 }
  0xd0   :  { %v212_v39 = vadd.f32 %v211_v38, %v210_v37 }
  0xd2   :  { %v213_v40 = vrot.slane %v212_v39, 1 }
  0xd4   :  { %v214_v41 = vadd.f32 %v213_v40, %v212_v39 }
  0xd6   :  { %228 = vrot.lane.b32.xlu0 %v214_v41, %s428_s1  ;;  %v216_v42 = vsel %vm215_vm3, %v214_v41, 0.0 }
 0x100   :  { %217 = vadd.xlane.f32.xlu0 %v216_v42 }
 0x148   :  { %v229_v43 = vpop.permute.xlu0 %228 }
 0x149   :  { %v231_v44 = vsel %vm215_vm3, %v229_v43, 0.0 }
 0x14a   :  { %232 = vadd.xlane.f32.xlu1 %v231_v44 }
 0x173   :  { %v218_v45 = vpop.xlane.xlu0 %217 }
 0x174   :  { %v219_v46 = vrot.slane %v218_v45, 4 }
 0x176   :  { %v220_v47 = vadd.f32 %v219_v46, %v218_v45 }
 0x178   :  { %v221_v48 = vrot.slane %v220_v47, 2 }
 0x17a   :  { %v222_v49 = vadd.f32 %v221_v48, %v220_v47 }
 0x17c   :  { %v223_v50 = vrot.slane %v222_v49, 1 }
 0x17e   :  { %v224_v51 = vadd.f32 %v223_v50, %v222_v49 }
 0x180   :  { %304 = vpush %v224_v51 }
 0x1b1   :  { %s305_s8 = spop %304 }
 0x1b2   :  { %s226_s10 = smul.f32 0.015625, %s305_s8 }
 0x1b4   :  { %s243_s14 = smul.f32 %s242_s3, %s226_s10 }
 0x1bd   :  { %v233_v52 = vpop.xlane.xlu1 %232 }
 0x1be   :  { %v234_v53 = vrot.slane %v233_v52, 4 }
 0x1c0   :  { %v235_v54 = vadd.f32 %v234_v53, %v233_v52 }
 0x1c2   :  { %v236_v55 = vrot.slane %v235_v54, 2 }
 0x1c4   :  { %v237_v56 = vadd.f32 %v236_v55, %v235_v54 }
 0x1c6   :  { %v238_v57 = vrot.slane %v237_v56, 1 }
 0x1c8   :  { %v239_v58 = vadd.f32 %v238_v57, %v237_v56 }
 0x1ca   :  { %306 = vpush %v239_v58 }
 0x1fb   :  { %s307_s12 = spop %306 }
 0x1fc   :  { %s241_s13 = smul.f32 0.015625, %s307_s12 }
 0x1fe   :  { %s245_s15 = smul.f32 %s296_s9, %s241_s13 }
 0x200   :  { %s246_s19 = sadd.f32 %s245_s15, %s243_s14 }
 0x202   :  { %s248_s20 = sadd.f32 %s297_s11, %s246_s19 }
 0x204   :  { %250 = sst [smem:[#allocation11]] %s248_s20 }
 0x205   :  { %259 = dma.smem_to_hbm %s429_s21, 16, %s257_s18, [#allocation6]  }
 0x206   :  { %420 = dma.done.wait [#allocation6], 16  }
 0x207   :  { %421 = vsyncadd [#allocation6], 4294967280 }
 0x208   :  { %264 = sfence }
 0x209   :  { %265 = vsyncpa [#allocation4], 1 }
 0x20a   :  { %266 = vsyncpa [#allocation9], 1 }
 0x20b   :  { %267 = vsyncpa [#allocation5], 1 }
 0x20c   :  { %268 = vsyncpa [#allocation6], 1 }

</bundles_post_ra>
